<compile_context>
chip_gen: v7x
topology: tpu7x:2x2x1
jax: 0.10.0
libtpu: 0.0.40
codegen_flags: <defaults>
</compile_context>

<pallas_src>
import jax
import jax.numpy as jnp
from jax.experimental import pallas as pl
from jax.experimental.pallas import tpu as pltpu


# ----------------------------------------------------------------------------
# helpers
# ----------------------------------------------------------------------------
def _round_up(x, m):
    return ((x + m - 1) // m) * m


def _m_tiling(m, *, split_threshold=2048, max_tile=8192):
    """Pick a lane-dense M tile (multiple of 128).

    Small problems get a single block (no per-step overhead, no pad waste).
    Only when M_pad is large enough to amortize per-step/per-core overhead do
    we split into >=2 blocks so v7x's second TensorCore gets "parallel" work.
    max_tile keeps (K * tile_m * 4B * 2 buffers + output tile) well under
    v5e's 16 MiB scoped-VMEM default (K<=145 here -> ~10 MiB at tile_m=8192).
    """
    m128 = _round_up(m, 128)
    if m128 <= split_threshold:
        return m128, m128
    tile = min(max_tile, _round_up(-(-m128 // 2), 128))
    n_blk = -(-m128 // tile)
    return tile, tile * n_blk


def _im2col_km(x_cnhw, kh, kw, stride, pad):
    """im2col in (K, M) orientation.

    x_cnhw: (C, N, H, W)  ->  patches (KH*KW*C, N*OH*OW), K ordered (ki, kj, c).
    Pure-JAX layout glue (static slices only).
    """
    c, n, h, w = x_cnhw.shape
    xp = jnp.pad(x_cnhw, ((0, 0), (0, 0), (pad, pad), (pad, pad)))
    oh = (h + 2 * pad - kh) // stride + 1
    ow = (w + 2 * pad - kw) // stride + 1
    taps = []
    for i in range(kh):
        for j in range(kw):
            taps.append(xp[:, :, i:i + stride * (oh - 1) + 1:stride,
                              j:j + stride * (ow - 1) + 1:stride])
    pk = jnp.concatenate(taps, axis=0)                 # (KH*KW*C, N, OH, OW)
    return pk.reshape(kh * kw * c, n * oh * ow), (oh, ow)


def _with_ones_row(p):
    """Append a ones row along K so the bias can be folded into the weight."""
    return jnp.concatenate([p, jnp.ones((1, p.shape[1]), jnp.float32)], axis=0)


# ----------------------------------------------------------------------------
# Pallas kernels (lane-dense: M on lanes, single MXU dot each)
# ----------------------------------------------------------------------------
def _gemm_kernel(p_ref, w_ref, o_ref):
    # (Cout, K) @ (K, tile_m); bias folded into last weight column / ones row.
    y = jnp.dot(w_ref[...], p_ref[...], preferred_element_type=jnp.float32)
    o_ref[...] = y.astype(o_ref.dtype)


def _gemm_relu_kernel(p_ref, w_ref, o_ref):
    y = jnp.dot(w_ref[...], p_ref[...], preferred_element_type=jnp.float32)
    o_ref[...] = jnp.maximum(y, 0.0).astype(o_ref.dtype)


def _lane_dense_gemm(patches_km, weight, *, cout, relu):
    """Launch one GEMM over a 1-D grid of M blocks.

    patches_km : (K, M) f32, M on lanes (bias-augmented with a ones row)
    weight     : (cout, K) f32, passed as one full block
    Returns the (cout, M) result.
    """
    k, m = patches_km.shape
    tile_m, m_pad = _m_tiling(m)
    p = patches_km if m_pad == m else jnp.pad(patches_km, ((0, 0), (0, m_pad - m)))
    n_blk = m_pad // tile_m
    kernel = _gemm_relu_kernel if relu else _gemm_kernel

    out = pl.pallas_call(
        kernel,
        out_shape=jax.ShapeDtypeStruct((cout, m_pad), jnp.float32),
        grid_spec=pltpu.PrefetchScalarGridSpec(
            num_scalar_prefetch=0,
            grid=(n_blk,),
            in_specs=[pl.BlockSpec((k, tile_m), lambda i: (0, i)),
                      pl.BlockSpec(weight.shape, lambda i: (0, 0))],
            out_specs=pl.BlockSpec((cout, tile_m), lambda i: (0, i)),
        ),
        compiler_params=pltpu.CompilerParams(
            dimension_semantics=("parallel",)),
    )(p, weight)
    return out if m_pad == m else out[:, :m]


# ----------------------------------------------------------------------------
# Model: conv1 -> conv2 -> conv3 -> relu
# ----------------------------------------------------------------------------
def init_params(key):
    def conv_init(k, cout, cin, kh, kw):
        k_w, k_b = jax.random.split(k)
        fan_in = cin * kh * kw
        bound = 1.0 / jnp.sqrt(fan_in)
        w = jax.random.uniform(k_w, (cout, cin, kh, kw), jnp.float32, -bound, bound)
        b = jax.random.uniform(k_b, (cout,), jnp.float32, -bound, bound)
        return w, b

    k1, k2, k3 = jax.random.split(key, 3)
    return {
        "conv1": conv_init(k1, 8, 3, 3, 3),    # Conv2d(3, 8, 3, stride=2, pad=1)
        "conv2": conv_init(k2, 16, 8, 1, 1),   # Conv2d(8, 16, 1, stride=1, pad=1)
        "conv3": conv_init(k3, 16, 16, 3, 3),  # Conv2d(16, 16, 3, stride=2, pad=1)
    }


@jax.jit
def model_forward(params, x_nchw):
    w1, b1 = params["conv1"]
    w2, b2 = params["conv2"]
    w3, b3 = params["conv3"]
    n = x_nchw.shape[0]

    # ---- call 1: conv1 and conv2 collapsed into ONE GEMM -------------------
    # conv2 is a 1x1 conv with no nonlinearity in between, so
    #   conv2(conv1(x)) interior = (w2 @ [w1 | b1]) @ [patches; 1] + b2
    x_cnhw = jnp.transpose(x_nchw, (1, 0, 2, 3)).astype(jnp.float32)   # (C,N,H,W)
    p1, (h1, w1sp) = _im2col_km(x_cnhw, 3, 3, stride=2, pad=1)         # (27, M1)
    p1 = _with_ones_row(p1)                                            # (28, M1)

    w1m = jnp.transpose(w1, (0, 2, 3, 1)).reshape(8, 27)               # (Cout,(ki,kj,c))
    w1aug = jnp.concatenate([w1m, b1.reshape(8, 1)], axis=1)           # (8, 28)
    w2m = w2.reshape(16, 8)
    w12 = (w2m @ w1aug).astype(jnp.float32)                            # (16, 28)
    w12 = w12.at[:, -1].add(b2)                                        # fold b2 in

    y2i = _lane_dense_gemm(p1, w12, cout=16, relu=False)               # (16, M1)

    # ---- conv2's padded border (padding=1 on a 1x1 conv is bias-only) ------
    y2i = y2i.reshape(16, n, h1, w1sp)
    y2 = jnp.broadcast_to(b2.reshape(16, 1, 1, 1), (16, n, h1 + 2, w1sp + 2))
    y2 = jax.lax.dynamic_update_slice(y2, y2i, (0, 0, 1, 1))

    # ---- call 2: conv3 + ReLU ----------------------------------------------
    p3, (h3, w3sp) = _im2col_km(y2, 3, 3, stride=2, pad=1)             # (144, M3)
    p3 = _with_ones_row(p3)                                            # (145, M3)

    w3m = jnp.transpose(w3, (0, 2, 3, 1)).reshape(16, 144)
    w3aug = jnp.concatenate([w3m, b3.reshape(16, 1)], axis=1).astype(jnp.float32)

    y3 = _lane_dense_gemm(p3, w3aug, cout=16, relu=True)               # (16, M3)
    y3 = y3.reshape(16, n, h3, w3sp)
    return jnp.transpose(y3, (1, 0, 2, 3))                             # -> NCHW


# ----------------------------------------------------------------------------
# pure-JAX reference (same groups=1 semantics) for validation
# ----------------------------------------------------------------------------
@jax.jit
def _ref_forward(params, x):
    def conv(x, w, b, stride, pad):
        y = jax.lax.conv_general_dilated(
            x, w, window_strides=(stride, stride),
            padding=((pad, pad), (pad, pad)),
            dimension_numbers=("NCHW", "OIHW", "NCHW"))
        return y + b.reshape(1, -1, 1, 1)

    w1, b1 = params["conv1"]
    w2, b2 = params["conv2"]
    w3, b3 = params["conv3"]
    y = conv(x, w1, b1, 2, 1)
    y = conv(y, w2, b2, 1, 1)
    y = conv(y, w3, b3, 2, 1)
    return jnp.maximum(y, 0.0)


if __name__ == "__main__":
    key = jax.random.PRNGKey(0)
    k_x, k_p = jax.random.split(key)

    # small input consistent with the module: NCHW, 3 input channels
    x = jax.random.normal(k_x, (2, 3, 32, 24), dtype=jnp.float32)
    params = init_params(k_p)

    out = jax.block_until_ready(model_forward(params, x))
    ref = jax.block_until_ready(_ref_forward(params, x))

    assert out.shape == (2, 16, 9, 7), out.shape
    assert bool(jnp.all(out >= 0.0))                       # relu applied
    assert bool(jnp.allclose(out, ref, rtol=1e-3, atol=1e-3))
    print("KERNEL_OK")
</pallas_src>

<mosaic_0001>
module attributes {stable_mosaic.version = 11 : i64} {
  func.func @_gemm_kernel(%arg0: i32, %arg1: memref<28x384xf32, #tpu.memory_space<vmem>>, %arg2: memref<16x28xf32, #tpu.memory_space<vmem>>, %arg3: memref<16x384xf32, #tpu.memory_space<vmem>>) attributes {dimension_semantics = [#tpu.dimension_semantics<parallel>], iteration_bounds = array<i64: 1>, scalar_prefetch = 0 : i64, scratch_operands = 0 : i64, tpu.core_type = #tpu.core_type<tc>, window_params = [{transform_indices = @transform_0, window_bounds = array<i64: 28, 384>}, {pipeline_mode = #tpu.pipeline_mode<synchronous>, transform_indices = @transform_1, window_bounds = array<i64: 16, 28>}, {transform_indices = @transform_2, window_bounds = array<i64: 16, 384>}]} {
    %c0 = arith.constant 0 : index
    %c0_0 = arith.constant 0 : index
    %0 = vector.load %arg2[%c0, %c0_0] : memref<16x28xf32, #tpu.memory_space<vmem>>, vector<16x28xf32>
    %c0_1 = arith.constant 0 : index
    %c0_2 = arith.constant 0 : index
    %1 = vector.load %arg1[%c0_1, %c0_2] : memref<28x384xf32, #tpu.memory_space<vmem>>, vector<28x384xf32>
    %cst = arith.constant dense<0.000000e+00> : vector<16x384xf32>
    %2 = tpu.matmul %0, %1, %cst {dimension_numbers = #tpu.dot_dimension_numbers<[1], [0], [0], [1], [0, 0, 1, 1], [], []>} : vector<16x28xf32>, vector<28x384xf32>, vector<16x384xf32> -> vector<16x384xf32>
    %c0_3 = arith.constant 0 : index
    %c0_4 = arith.constant 0 : index
    %3 = vector.load %arg3[%c0_3, %c0_4] : memref<16x384xf32, #tpu.memory_space<vmem>>, vector<16x384xf32>
    tpu.vector_store %arg3[%c0_3, %c0_4], %2 {strides = array<i32>} : memref<16x384xf32, #tpu.memory_space<vmem>>, vector<16x384xf32>,
    return
  }
  func.func @transform_0(%arg0: i32) -> (i32, i32) {
    %c0_i32 = arith.constant 0 : i32
    %c0_i32_0 = arith.constant 0 : i32
    return %c0_i32, %arg0 : i32, i32
  }
  func.func @transform_1(%arg0: i32) -> (i32, i32) {
    %c0_i32 = arith.constant 0 : i32
    %c0_i32_0 = arith.constant 0 : i32
    %c0_i32_1 = arith.constant 0 : i32
    return %c0_i32, %c0_i32_0 : i32, i32
  }
  func.func @transform_2(%arg0: i32) -> (i32, i32) {
    %c0_i32 = arith.constant 0 : i32
    %c0_i32_0 = arith.constant 0 : i32
    return %c0_i32, %arg0 : i32, i32
  }
}

module attributes {stable_mosaic.version = 11 : i64} {
  func.func @_gemm_relu_kernel(%arg0: i32, %arg1: memref<145x128xf32, #tpu.memory_space<vmem>>, %arg2: memref<16x145xf32, #tpu.memory_space<vmem>>, %arg3: memref<16x128xf32, #tpu.memory_space<vmem>>) attributes {dimension_semantics = [#tpu.dimension_semantics<parallel>], iteration_bounds = array<i64: 1>, scalar_prefetch = 0 : i64, scratch_operands = 0 : i64, tpu.core_type = #tpu.core_type<tc>, window_params = [{transform_indices = @transform_0, window_bounds = array<i64: 145, 128>}, {pipeline_mode = #tpu.pipeline_mode<synchronous>, transform_indices = @transform_1, window_bounds = array<i64: 16, 145>}, {transform_indices = @transform_2, window_bounds = array<i64: 16, 128>}]} {
    %c0 = arith.constant 0 : index
    %c0_0 = arith.constant 0 : index
    %0 = vector.load %arg2[%c0, %c0_0] : memref<16x145xf32, #tpu.memory_space<vmem>>, vector<16x145xf32>
    %c0_1 = arith.constant 0 : index
    %c0_2 = arith.constant 0 : index
    %1 = vector.load %arg1[%c0_1, %c0_2] : memref<145x128xf32, #tpu.memory_space<vmem>>, vector<145x128xf32>
    %cst = arith.constant dense<0.000000e+00> : vector<16x128xf32>
    %2 = tpu.matmul %0, %1, %cst {dimension_numbers = #tpu.dot_dimension_numbers<[1], [0], [0], [1], [0, 0, 1, 1], [], []>} : vector<16x145xf32>, vector<145x128xf32>, vector<16x128xf32> -> vector<16x128xf32>
    %cst_3 = arith.constant 0.000000e+00 : f32
    %3 = vector.broadcast %cst_3 : f32 to vector<16x128xf32>
    %4 = arith.maximumf %2, %3 : vector<16x128xf32>
    %c0_4 = arith.constant 0 : index
    %c0_5 = arith.constant 0 : index
    %5 = vector.load %arg3[%c0_4, %c0_5] : memref<16x128xf32, #tpu.memory_space<vmem>>, vector<16x128xf32>
    tpu.vector_store %arg3[%c0_4, %c0_5], %4 {strides = array<i32>} : memref<16x128xf32, #tpu.memory_space<vmem>>, vector<16x128xf32>,
    return
  }
  func.func @transform_0(%arg0: i32) -> (i32, i32) {
    %c0_i32 = arith.constant 0 : i32
    %c0_i32_0 = arith.constant 0 : i32
    return %c0_i32, %arg0 : i32, i32
  }
  func.func @transform_1(%arg0: i32) -> (i32, i32) {
    %c0_i32 = arith.constant 0 : i32
    %c0_i32_0 = arith.constant 0 : i32
    %c0_i32_1 = arith.constant 0 : i32
    return %c0_i32, %c0_i32_0 : i32, i32
  }
  func.func @transform_2(%arg0: i32) -> (i32, i32) {
    %c0_i32 = arith.constant 0 : i32
    %c0_i32_0 = arith.constant 0 : i32
    return %c0_i32, %arg0 : i32, i32
  }
}

</mosaic_0001>

<bundles_post_ra>
// kernel: model_forward.2
= control target key start
LH: loop header
LB: loop body
LE: loop exit
PB: predicated region body
PF: predicated region fallthrough
CT: control target
= control target key end

     0   :  { %vm32_vm0 = vcmask 1043456   ;;  %v250_v3 = vmov 0.0   ;;  %vm251_vm1 = vmmov 1   ;;  %vm25_vm3 = vcmask 228352   ;;  %s340_s0 = inlined_call_operand.vmem [shape: f32[28,384], index: 0, kind: input, shape index: {}]   ;;  %s341_s1 = inlined_call_operand.vmem [shape: f32[16,28], index: 1, kind: input, shape index: {}]   ;;  %s342_s2 = inlined_call_operand.vmem [shape: f32[16,384], index: 2, kind: output, shape index: {}]  }
   0x1   :  { %v14_v0 = vld [vmem:[%s340_s0 + $0x8] sm:$0xff]  ;;  %v17_v1 = vld [vmem:[%s340_s0 + $0x20] sm:$0xff]  ;;  %106 = vmatprep.mubr.f32.mxu0 %v250_v3  ;;  %v16_v5 = vld [vmem:[%s340_s0 + $0x18] sm:$0xff] }
   0x2   :  { %v13_v2 = vld [vmem:[%s340_s0] sm:$0xff]  ;;  %v228_v4 = vpack.c.bf16 %v17_v1, %v14_v0  ;;  %v15_v6 = vld [vmem:[%s340_s0 + $0x10] sm:$0xff]  ;;  %v18_v7 = vld [vmem:[%s340_s0 + $0x28] sm:$0xff] }
   0x3   :  { %v230_v8 = vpack.c.bf16 %v16_v5, %v13_v2  ;;  %v238_v9 = vpack.c.bf16 %v18_v7, %v15_v6  ;;  %v20_v10 = vld [vmem:[%s340_s0 + $0x38] sm:$0xff]  ;;  %v23_v11 = vld [vmem:[%s340_s0 + $0x50] sm:$0xf]  ;;  %vm292_vm2 = vmpackc.low %vm32_vm0, %vm251_vm1 }
   0x4   :  { %229 = vmatprep.subr.bf16.mxu0 %v228_v4  ;;  %v232_v13 = vpack.c.bf16 %v23_v11, %v20_v10  ;;  %v19_v14 = vld [vmem:[%s340_s0 + $0x30] sm:$0xff]  ;;  %v22_v15 = vld [vmem:[%s340_s0 + $0x48] sm:$0xf]  ;;  %v21_v16 = vld [vmem:[%s340_s0 + $0x40] sm:$0xff] }
   0x5   :  { %231 = vmatpush1.bf16.msra.mxu0 %v230_v8  ;;  %239 = vmatprep.subr.bf16.mxu1 %v238_v9  ;;  %v235_v17 = vpack.c.bf16 %v22_v15, %v19_v14  ;;  %v24_v18 = vld [vmem:[%s340_s0 + $0x58] sm:$0xf]  ;;  %v11_v20 = vld [vmem:[%s341_s1] sm:$0xff]  ;;  %v12_v21 = vld [vmem:[%s341_s1 + $0x8] sm:$0xff] }
   0x6   :  { %234 = vmatprep.subr.msk.bf16.mxu0 %vm292_vm2, %v232_v13  ;;  %241 = vmatpush3.bf16.msra.mxu1 %v238_v9  ;;  %v242_v19 = vpack.c.bf16 %v24_v18, %v21_v16 }
   0x7   :  { %225 = vmatprep.mubr.msk.f32.mxu1 %vm25_vm3, %v11_v20 }
   0x8   :  { %244 = vmatprep.subr.msk.bf16.mxu1 %vm292_vm2, %v242_v19 }
   0x9   :  { %237 = vmatpush1.bf16.msk.msra.mxu0 %vm292_vm2, %v235_v17 }
   0xa   :  { %247 = vmatpush3.bf16.msk.msra.mxu1 %vm292_vm2, %v242_v19 }
   0xc   :  { %206 = vmatmul.mubr.msk.f32.vlgmr.msra.gmra.mrb[0].mxu0 %vm25_vm3, %v11_v20 }
   0xd   :  { %112 = vmatprep.mubr.f32.mxu0 %v250_v3  ;;  %226 = vmatmul.mubr.msk.f32.vlgmr.msra.gmra.mrb[0].mxu1 %vm25_vm3, %v12_v21 }
  0x10   :  { %207 = vmatmul.mubr.msk.f32.gmra.mrb[2].mxu0 %vm25_vm3, %v12_v21 }
  0xdf   :  { %v108_v22 = vpop.f32.mrb[0].mxu0 }
  0xe0   :  { %194 = vst [vmem:[%s342_s2] sm:$0xff] %v108_v22  ;;  %v110_v23 = vpop.f32.mrb[1].mxu0  ;;  %v227_v24 = vpop.f32.mrb[0].mxu1 }
  0xe1   :  { %195 = vst [vmem:[%s342_s2 + $0x8] sm:$0xff] %v110_v23  ;;  %199 = vst [vmem:[%s342_s2 + $0x28] sm:$0xff] %v227_v24  ;;  %v185_v25 = vpop.f32.mrb[1].mxu1 }
  0xe2   :  { %196 = vst [vmem:[%s342_s2 + $0x10] sm:$0xff] %v185_v25 }
  0xe3   :  { %v114_v26 = vpop.f32.mrb[2].mxu0 }
  0xe4   :  { %197 = vst [vmem:[%s342_s2 + $0x18] sm:$0xff] %v114_v26  ;;  %v116_v27 = vpop.f32.mrb[3].mxu0 }
  0xe5   :  { %198 = vst [vmem:[%s342_s2 + $0x20] sm:$0xff] %v116_v27 }

// kernel: model_forward.3
= control target key start
LH: loop header
LB: loop body
LE: loop exit
PB: predicated region body
PF: predicated region fallthrough
CT: control target
= control target key end

     0   :  { %v180_v0 = vmov 0.0|0.0   ;;  %vm34_vm0 = vcmask 138240   ;;  %v181_v30 = vmov 0.0   ;;  %vm41_vm1 = vcmask 1040384   ;;  %s290_s0 = inlined_call_operand.vmem [shape: f32[145,128], index: 0, kind: input, shape index: {}]   ;;  %s291_s1 = inlined_call_operand.vmem [shape: f32[16,145], index: 1, kind: input, shape index: {}]   ;;  %s292_s2 = inlined_call_operand.vmem [shape: f32[16,128], index: 2, kind: output, shape index: {}]  }
   0x1   :  { %131 = vmatprep.subr.bf16.mxu0 %v180_v0  ;;  %158 = vmatprep.subr.bf16.mxu1 %v180_v0  ;;  %v15_v1 = vld [vmem:[%s290_s0] sm:$0xff]  ;;  %v16_v2 = vld [vmem:[%s290_s0 + $0x8] sm:$0xff]  ;;  %v17_v3 = vld [vmem:[%s290_s0 + $0x10] sm:$0xff] }
   0x2   :  { %v132_v4 = vpack.c.bf16 %v16_v2, %v15_v1  ;;  %v18_v5 = vld [vmem:[%s290_s0 + $0x18] sm:$0xff]  ;;  %v19_v7 = vld [vmem:[%s290_s0 + $0x20] sm:$0xff]  ;;  %v20_v8 = vld [vmem:[%s290_s0 + $0x28] sm:$0xff] }
   0x3   :  { %v135_v6 = vpack.c.bf16 %v18_v5, %v17_v3  ;;  %v12_v9 = vld [vmem:[%s291_s1 + $0x8] sm:$0xff]  ;;  %v14_v10 = vld [vmem:[%s291_s1 + $0x18] sm:$0xff]  ;;  %v138_v11 = vpack.c.bf16 %v20_v8, %v19_v7  ;;  %v21_v12 = vld [vmem:[%s290_s0 + $0x30] sm:$0xff] }
   0x4   :  { %133 = vmatpush1.bf16.msra.mxu0 %v132_v4  ;;  %168 = vmatpush1.bf16.msra.mxu1 %v132_v4  ;;  %v22_v13 = vld [vmem:[%s290_s0 + $0x38] sm:$0xff]  ;;  %v23_v15 = vld [vmem:[%s290_s0 + $0x40] sm:$0xff]  ;;  %v24_v16 = vld [vmem:[%s290_s0 + $0x48] sm:$0xff] }
   0x5   :  { %134 = vmatprep.subr.bf16.mxu0 %v180_v0  ;;  %159 = vmatprep.subr.bf16.mxu1 %v180_v0  ;;  %v141_v14 = vpack.c.bf16 %v22_v13, %v21_v12  ;;  %v144_v17 = vpack.c.bf16 %v24_v16, %v23_v15  ;;  %v25_v18 = vld [vmem:[%s290_s0 + $0x50] sm:$0xff]  ;;  %v26_v19 = vld [vmem:[%s290_s0 + $0x58] sm:$0xff]  ;;  %v27_v21 = vld [vmem:[%s290_s0 + $0x60] sm:$0xff] }
   0x6   :  { %129 = vmatprep.mubr.msk.f32.mxu0 %vm34_vm0, %v12_v9  ;;  %130 = vmatprep.mubr.msk.f32.mxu1 %vm34_vm0, %v14_v10  ;;  %v147_v20 = vpack.c.bf16 %v26_v19, %v25_v18  ;;  %v28_v22 = vld [vmem:[%s290_s0 + $0x68] sm:$0xff]  ;;  %v29_v24 = vld [vmem:[%s290_s0 + $0x70] sm:$0xff]  ;;  %v30_v25 = vld [vmem:[%s290_s0 + $0x78] sm:$0xff] }
   0x7   :  { %v150_v23 = vpack.c.bf16 %v28_v22, %v27_v21  ;;  %v153_v26 = vpack.c.bf16 %v30_v25, %v29_v24  ;;  %v31_v27 = vld [vmem:[%s290_s0 + $0x80] sm:$0xff]  ;;  %v32_v28 = vld [vmem:[%s290_s0 + $0x88] sm:$0xff]  ;;  %v33_v31 = vld [vmem:[%s290_s0 + $0x90] sm:$0x1] }
   0x8   :  { %136 = vmatpush1.bf16.msra.mxu0 %v135_v6  ;;  %169 = vmatpush1.bf16.msra.mxu1 %v135_v6  ;;  %v156_v29 = vpack.c.bf16 %v32_v28, %v31_v27  ;;  %v11_v32 = vld [vmem:[%s291_s1] sm:$0xff]  ;;  %v13_v33 = vld [vmem:[%s291_s1 + $0x10] sm:$0xff] }
   0x9   :  { %137 = vmatprep.subr.bf16.mxu0 %v180_v0  ;;  %160 = vmatprep.subr.bf16.mxu1 %v180_v0 }
   0xc   :  { %139 = vmatpush1.bf16.msra.mxu0 %v138_v11  ;;  %170 = vmatpush1.bf16.msra.mxu1 %v138_v11 }
   0xd   :  { %140 = vmatprep.subr.bf16.mxu0 %v180_v0  ;;  %161 = vmatprep.subr.bf16.mxu1 %v180_v0 }
  0x10   :  { %142 = vmatpush1.bf16.msra.mxu0 %v141_v14  ;;  %171 = vmatpush1.bf16.msra.mxu1 %v141_v14 }
  0x11   :  { %143 = vmatprep.subr.bf16.mxu0 %v180_v0  ;;  %162 = vmatprep.subr.bf16.mxu1 %v180_v0 }
  0x14   :  { %145 = vmatpush1.bf16.msra.mxu0 %v144_v17  ;;  %172 = vmatpush1.bf16.msra.mxu1 %v144_v17 }
  0x15   :  { %146 = vmatprep.subr.bf16.mxu0 %v180_v0  ;;  %163 = vmatprep.subr.bf16.mxu1 %v180_v0 }
  0x18   :  { %148 = vmatpush1.bf16.msra.mxu0 %v147_v20  ;;  %173 = vmatpush1.bf16.msra.mxu1 %v147_v20 }
  0x19   :  { %149 = vmatprep.subr.bf16.mxu0 %v180_v0  ;;  %164 = vmatprep.subr.bf16.mxu1 %v180_v0 }
  0x1c   :  { %151 = vmatpush1.bf16.msra.mxu0 %v150_v23  ;;  %174 = vmatpush1.bf16.msra.mxu1 %v150_v23 }
  0x1d   :  { %152 = vmatprep.subr.bf16.mxu0 %v180_v0  ;;  %165 = vmatprep.subr.bf16.mxu1 %v180_v0 }
  0x20   :  { %154 = vmatpush1.bf16.msra.mxu0 %v153_v26  ;;  %175 = vmatpush1.bf16.msra.mxu1 %v153_v26 }
  0x21   :  { %155 = vmatprep.subr.bf16.mxu0 %v180_v0  ;;  %166 = vmatprep.subr.bf16.mxu1 %v180_v0 }
  0x24   :  { %157 = vmatpush1.bf16.msra.mxu0 %v156_v29  ;;  %176 = vmatpush1.bf16.msra.mxu1 %v156_v29 }
  0x25   :  { %81 = vmatprep.subr.mxu0 %v181_v30  ;;  %167 = vmatprep.subr.mxu1 %v181_v30 }
  0x28   :  { %128 = vmatpush1.msk.msra.mxu0 %vm41_vm1, %v33_v31  ;;  %177 = vmatpush1.msk.msra.mxu1 %vm41_vm1, %v33_v31 }
  0x29   :  { %110 = vmatmul.mubr.f32.vlgmr.msra.gmra.mrb[0].mxu0 %v11_v32  ;;  %115 = vmatmul.mubr.f32.vlgmr.msra.gmra.mrb[0].mxu1 %v13_v33 }
  0xfc   :  { %v111_v34 = vpop.f32.mrb[0].mxu0  ;;  %v116_v35 = vpop.f32.mrb[0].mxu1 }
  0xfd   :  { %v120_v36 = vmax.f32 %v111_v34, 0.0  ;;  %v121_v37 = vmax.f32 %v116_v35, 0.0  ;;  %v113_v38 = vpop.f32.mrb[1].mxu0  ;;  %v118_v39 = vpop.f32.mrb[1].mxu1 }
  0xff   :  { %122 = vst [vmem:[%s292_s2] sm:$0xff] %v120_v36  ;;  %123 = vst [vmem:[%s292_s2 + $0x8] sm:$0xff] %v121_v37 }

</bundles_post_ra>
